<compile_context>
chip_gen: v5e
topology: v5e:2x2
jax: 0.10.0
libtpu: 0.0.40
codegen_flags: <defaults>
</compile_context>

<pallas_src>
import functools

import jax
import jax.numpy as jnp
import numpy as np
from jax.experimental import pallas as pl
from jax.experimental.pallas import tpu as pltpu


def _round_up(a, m):
    return ((a + m - 1) // m) * m


def _batch_pool_kernel(bgt_ref, brb_ref, bfirst_ref, starts_ref,
                       x_ref, o_ref, *, fill, rows_per_block, groups_per_tile):
    i = pl.program_id(1)        # work-item index along the "arbitrary" axis
    gt = bgt_ref[i]             # group tile handled by this work item
    rb = brb_ref[i]             # row block of the sorted x handled here

    # First work item of this group tile: initialize the resident output tile.
    @pl.when(bfirst_ref[i] == 1)
    def _init():
        o_ref[...] = jnp.full(o_ref.shape, fill, o_ref.dtype)

    x_blk = x_ref[...]                                            # (T, TD)
    blk_lo = rb * rows_per_block
    blk_hi = blk_lo + rows_per_block
    row_ids = blk_lo + jax.lax.broadcasted_iota(
        jnp.int32, (rows_per_block, 1), 0)                        # (T, 1)

    g0 = gt * groups_per_tile
    # Read the 9 group boundaries once (SMEM scalar loads), reuse below.
    bounds = [starts_ref[g0 + s] for s in range(groups_per_tile + 1)]

    for s in range(groups_per_tile):                              # static unroll (8)
        lo = bounds[s]
        hi = bounds[s + 1]

        # Only touch groups whose sorted row-range overlaps this row block;
        # skipping avoids a full (T, TD) select + sublane reduction per
        # non-overlapping group (most of them when groups are large).
        @pl.when((hi > blk_lo) & (lo < blk_hi))
        def _update(s=s, lo=lo, hi=hi):
            mask = (row_ids >= lo) & (row_ids < hi)               # (T, 1)
            contrib = jnp.max(jnp.where(mask, x_blk, fill),
                              axis=0, keepdims=True)              # (1, TD)
            o_ref[pl.ds(s, 1), :] = jnp.maximum(o_ref[pl.ds(s, 1), :], contrib)


def batch_pooling(x, batch, num_groups=None, *,
                  row_block=512, d_tile=512, groups_per_tile=8):
    """Pallas TPU implementation of BatchPooling.forward(x, batch).

    Pass num_groups (== batch.max() + 1) to stay jittable / avoid a host sync;
    if omitted it is read from `batch` (host round trip, eager only).
    Empty groups produce rows filled with the dtype minimum (-inf for floats);
    PyTorch's .max(0) on an empty selection would raise instead.
    """
    N, D = x.shape
    if num_groups is None:
        # Mirrors torch's data-dependent `batch.max() + 1` (host sync).
        # TODO(synk): data-dependent output shape has no jittable equivalent.
        num_groups = int(jax.device_get(jnp.max(batch))) + 1
    B = int(num_groups)

    GB = int(groups_per_tile)
    B_pad = _round_up(B, GB)
    num_gt = B_pad // GB

    # Row-block size: multiple of 8 sublanes, capped by row_block.
    T = _round_up(max(1, min(int(row_block), N)), 8)
    N_pad = _round_up(N, T)
    NRB = N_pad // T                 # row blocks in the sorted/padded x
    NB = NRB + num_gt                # static upper bound on work items

    # Feature tiling: lane-dense multiples of 128.
    D_pad = _round_up(D, 128)
    if D_pad <= d_tile:
        TD = D_pad
    else:
        TD = _round_up(int(d_tile), 128)
        D_pad = _round_up(D_pad, TD)
    num_dt = D_pad // TD

    if jnp.issubdtype(x.dtype, jnp.floating):
        fill = float("-inf")
    else:
        fill = int(jnp.iinfo(x.dtype).min)

    batch = batch.astype(jnp.int32)

    # ---- layout plumbing (plain XLA, O(N*D) once): sort rows by group ------
    order = jnp.argsort(batch)
    x_sorted = jnp.take(x, order, axis=0)
    x_sorted = jnp.pad(x_sorted, ((0, N_pad - N), (0, D_pad - D)),
                       constant_values=fill)

    # Per-group row boundaries in the sorted layout (prefetched into SMEM).
    counts = jnp.zeros((B_pad,), jnp.int32).at[batch].add(1)
    starts = jnp.concatenate(
        [jnp.zeros((1,), jnp.int32), jnp.cumsum(counts, dtype=jnp.int32)])

    # Work list: for every group tile, the row blocks overlapping its rows.
    gt_starts = starts[0:B_pad:GB]                      # (num_gt,)
    gt_ends = starts[GB:B_pad + 1:GB]                   # (num_gt,)
    first_rb = jnp.clip(gt_starts // T, 0, NRB - 1)
    last_rb = jnp.clip(
        jnp.where(gt_ends > gt_starts, (gt_ends - 1) // T, first_rb),
        0, NRB - 1)
    nblk = (last_rb - first_rb + 1).astype(jnp.int32)   # >= 1 per group tile
    offs = jnp.concatenate(
        [jnp.zeros((1,), jnp.int32), jnp.cumsum(nblk, dtype=jnp.int32)])

    wid = jnp.arange(NB, dtype=jnp.int32)
    gt_of = jnp.clip(jnp.searchsorted(offs, wid, side="right") - 1,
                     0, num_gt - 1).astype(jnp.int32)
    rb_of = jnp.minimum(first_rb[gt_of] + (wid - offs[gt_of]),
                        last_rb[gt_of]).astype(jnp.int32)
    is_first = (wid == offs[gt_of]).astype(jnp.int32)

    kernel = functools.partial(_batch_pool_kernel, fill=fill,
                               rows_per_block=T, groups_per_tile=GB)

    out_padded = pl.pallas_call(
        kernel,
        out_shape=jax.ShapeDtypeStruct((B_pad, D_pad), x.dtype),
        grid_spec=pltpu.PrefetchScalarGridSpec(
            num_scalar_prefetch=4,
            grid=(num_dt, NB),
            in_specs=[
                pl.BlockSpec((T, TD),
                             lambda d, i, bgt, brb, bfirst, st: (brb[i], d)),
            ],
            out_specs=pl.BlockSpec((GB, TD),
                                   lambda d, i, bgt, brb, bfirst, st: (bgt[i], d)),
        ),
        compiler_params=pltpu.CompilerParams(
            dimension_semantics=("parallel", "arbitrary"),
        ),
    )(gt_of, rb_of, is_first, starts, x_sorted)

    return out_padded[:B, :D]


if __name__ == "__main__":
    key = jax.random.PRNGKey(0)
    k_x, k_perm = jax.random.split(key)

    # Small shapes: N=64 rows, D=128 features, B=10 groups with unequal sizes
    # and an unsorted group assignment (exercises the sort + work-list path).
    N, D, B = 64, 128, 10
    x = jax.random.normal(k_x, (N, D), dtype=jnp.float32)
    sizes = [3, 9, 4, 12, 2, 8, 6, 10, 5, 5]          # sums to 64, all non-empty
    batch = jnp.concatenate(
        [jnp.full((s,), g, jnp.int32) for g, s in enumerate(sizes)])
    batch = jax.random.permutation(k_perm, batch)     # unsorted group ids

    pooled = jax.jit(batch_pooling, static_argnames=("num_groups", "row_block"))

    # Reference (numpy), mirroring the PyTorch loop.
    x_np = np.asarray(x)
    b_np = np.asarray(batch)
    ref = np.stack([x_np[b_np == g].max(axis=0) for g in range(B)])

    # Multi-row-block path (row_block=32 -> 2 blocks) and default single-block
    # path both checked against the reference.
    out_a = jax.block_until_ready(pooled(x, batch, num_groups=B, row_block=32))
    out_b = jax.block_until_ready(pooled(x, batch, num_groups=B))
    np.testing.assert_allclose(np.asarray(out_a), ref, rtol=1e-6, atol=1e-6)
    np.testing.assert_allclose(np.asarray(out_b), ref, rtol=1e-6, atol=1e-6)

    print("KERNEL_OK")
</pallas_src>

<mosaic_0001>
module attributes {stable_mosaic.version = 11 : i64} {
  func.func @_batch_pool_kernel(%arg0: i32, %arg1: i32, %arg2: memref<4xi32, #tpu.memory_space<smem>>, %arg3: memref<4xi32, #tpu.memory_space<smem>>, %arg4: memref<4xi32, #tpu.memory_space<smem>>, %arg5: memref<17xi32, #tpu.memory_space<smem>>, %arg6: memref<32x128xf32, #tpu.memory_space<vmem>>, %arg7: memref<8x128xf32, #tpu.memory_space<vmem>>) attributes {dimension_semantics = [#tpu.dimension_semantics<parallel>, #tpu.dimension_semantics<arbitrary>], iteration_bounds = array<i64: 1, 4>, scalar_prefetch = 4 : i64, scratch_operands = 0 : i64, tpu.core_type = #tpu.core_type<tc>, window_params = [{transform_indices = @transform_0, window_bounds = array<i64: 32, 128>}, {transform_indices = @transform_1, window_bounds = array<i64: 8, 128>}]} {
    %0 = arith.index_cast %arg1 : i32 to index
    %1 = memref.load %arg2[%0] : memref<4xi32, #tpu.memory_space<smem>>
    %2 = arith.index_cast %arg1 : i32 to index
    %3 = memref.load %arg3[%2] : memref<4xi32, #tpu.memory_space<smem>>
    %4 = arith.index_cast %arg1 : i32 to index
    %5 = memref.load %arg4[%4] : memref<4xi32, #tpu.memory_space<smem>>
    %c1_i32 = arith.constant 1 : i32
    %6 = arith.cmpi eq, %5, %c1_i32 : i32
    %7 = arith.extui %6 : i1 to i32
    %c0_i32 = arith.constant 0 : i32
    %8 = arith.cmpi ne, %7, %c0_i32 : i32
    scf.if %8 {
      %cst = arith.constant 0xFF800000 : f32
      %83 = vector.broadcast %cst : f32 to vector<8x128xf32>
      %c0_13 = arith.constant 0 : index
      %c0_14 = arith.constant 0 : index
      %84 = vector.load %arg7[%c0_13, %c0_14] : memref<8x128xf32, #tpu.memory_space<vmem>>, vector<8x128xf32>
      tpu.vector_store %arg7[%c0_13, %c0_14], %83 {strides = array<i32>} : memref<8x128xf32, #tpu.memory_space<vmem>>, vector<8x128xf32>,
    } else {
    }
    %c0 = arith.constant 0 : index
    %c0_0 = arith.constant 0 : index
    %9 = vector.load %arg6[%c0, %c0_0] : memref<32x128xf32, #tpu.memory_space<vmem>>, vector<32x128xf32>
    %c32_i32 = arith.constant 32 : i32
    %10 = arith.muli %3, %c32_i32 : i32
    %c32_i32_1 = arith.constant 32 : i32
    %11 = arith.addi %10, %c32_i32_1 : i32
    %12 = tpu.iota {dimensions = array<i32: 0>} : vector<32x1xi32>
    %13 = vector.broadcast %10 : i32 to vector<32x1xi32>
    %14 = arith.addi %13, %12 : vector<32x1xi32>
    %c8_i32 = arith.constant 8 : i32
    %15 = arith.muli %1, %c8_i32 : i32
    %c0_i32_2 = arith.constant 0 : i32
    %16 = arith.addi %15, %c0_i32_2 : i32
    %17 = arith.index_cast %16 : i32 to index
    %18 = memref.load %arg5[%17] : memref<17xi32, #tpu.memory_space<smem>>
    %c1_i32_3 = arith.constant 1 : i32
    %19 = arith.addi %15, %c1_i32_3 : i32
    %20 = arith.index_cast %19 : i32 to index
    %21 = memref.load %arg5[%20] : memref<17xi32, #tpu.memory_space<smem>>
    %c2_i32 = arith.constant 2 : i32
    %22 = arith.addi %15, %c2_i32 : i32
    %23 = arith.index_cast %22 : i32 to index
    %24 = memref.load %arg5[%23] : memref<17xi32, #tpu.memory_space<smem>>
    %c3_i32 = arith.constant 3 : i32
    %25 = arith.addi %15, %c3_i32 : i32
    %26 = arith.index_cast %25 : i32 to index
    %27 = memref.load %arg5[%26] : memref<17xi32, #tpu.memory_space<smem>>
    %c4_i32 = arith.constant 4 : i32
    %28 = arith.addi %15, %c4_i32 : i32
    %29 = arith.index_cast %28 : i32 to index
    %30 = memref.load %arg5[%29] : memref<17xi32, #tpu.memory_space<smem>>
    %c5_i32 = arith.constant 5 : i32
    %31 = arith.addi %15, %c5_i32 : i32
    %32 = arith.index_cast %31 : i32 to index
    %33 = memref.load %arg5[%32] : memref<17xi32, #tpu.memory_space<smem>>
    %c6_i32 = arith.constant 6 : i32
    %34 = arith.addi %15, %c6_i32 : i32
    %35 = arith.index_cast %34 : i32 to index
    %36 = memref.load %arg5[%35] : memref<17xi32, #tpu.memory_space<smem>>
    %c7_i32 = arith.constant 7 : i32
    %37 = arith.addi %15, %c7_i32 : i32
    %38 = arith.index_cast %37 : i32 to index
    %39 = memref.load %arg5[%38] : memref<17xi32, #tpu.memory_space<smem>>
    %c8_i32_4 = arith.constant 8 : i32
    %40 = arith.addi %15, %c8_i32_4 : i32
    %41 = arith.index_cast %40 : i32 to index
    %42 = memref.load %arg5[%41] : memref<17xi32, #tpu.memory_space<smem>>
    %43 = arith.cmpi sgt, %21, %10 : i32
    %44 = arith.cmpi slt, %18, %11 : i32
    %45 = arith.andi %43, %44 : i1
    %46 = arith.extui %45 : i1 to i32
    %c0_i32_5 = arith.constant 0 : i32
    %47 = arith.cmpi ne, %46, %c0_i32_5 : i32
    scf.if %47 {
      %83 = vector.broadcast %18 : i32 to vector<32x1xi32>
      %84 = arith.cmpi sge, %14, %83 : vector<32x1xi32>
      %85 = vector.broadcast %21 : i32 to vector<32x1xi32>
      %86 = arith.cmpi slt, %14, %85 : vector<32x1xi32>
      %87 = arith.andi %84, %86 : vector<32x1xi1>
      %cst = arith.constant 0xFF800000 : f32
      %88 = vector.shape_cast %87 : vector<32x1xi1> to vector<32x1xi1>
      %89 = vector.broadcast %88 : vector<32x1xi1> to vector<32x128xi1>
      %90 = vector.broadcast %cst : f32 to vector<32x128xf32>
      %91 = arith.select %89, %9, %90 : vector<32x128xi1>, vector<32x128xf32>
      %cst_13 = arith.constant dense<0xFF800000> : vector<128xf32>
      %92 = vector.multi_reduction <maximumf>, %91, %cst_13 [0] : vector<32x128xf32> to vector<128xf32>
      %93 = vector.shape_cast %92 : vector<128xf32> to vector<1x128xf32>
      %c0_14 = arith.constant 0 : index
      %c0_15 = arith.constant 0 : index
      %94 = vector.load %arg7[%c0_14, %c0_15] : memref<8x128xf32, #tpu.memory_space<vmem>>, vector<1x128xf32>
      %95 = arith.maximumf %94, %93 : vector<1x128xf32>
      %c0_16 = arith.constant 0 : index
      %c0_17 = arith.constant 0 : index
      %96 = vector.load %arg7[%c0_16, %c0_17] : memref<8x128xf32, #tpu.memory_space<vmem>>, vector<1x128xf32>
      tpu.vector_store %arg7[%c0_16, %c0_17], %95 {strides = array<i32>} : memref<8x128xf32, #tpu.memory_space<vmem>>, vector<1x128xf32>,
    } else {
    }
    %48 = arith.cmpi sgt, %24, %10 : i32
    %49 = arith.cmpi slt, %21, %11 : i32
    %50 = arith.andi %48, %49 : i1
    %51 = arith.extui %50 : i1 to i32
    %c0_i32_6 = arith.constant 0 : i32
    %52 = arith.cmpi ne, %51, %c0_i32_6 : i32
    scf.if %52 {
      %83 = vector.broadcast %21 : i32 to vector<32x1xi32>
      %84 = arith.cmpi sge, %14, %83 : vector<32x1xi32>
      %85 = vector.broadcast %24 : i32 to vector<32x1xi32>
      %86 = arith.cmpi slt, %14, %85 : vector<32x1xi32>
      %87 = arith.andi %84, %86 : vector<32x1xi1>
      %cst = arith.constant 0xFF800000 : f32
      %88 = vector.shape_cast %87 : vector<32x1xi1> to vector<32x1xi1>
      %89 = vector.broadcast %88 : vector<32x1xi1> to vector<32x128xi1>
      %90 = vector.broadcast %cst : f32 to vector<32x128xf32>
      %91 = arith.select %89, %9, %90 : vector<32x128xi1>, vector<32x128xf32>
      %cst_13 = arith.constant dense<0xFF800000> : vector<128xf32>
      %92 = vector.multi_reduction <maximumf>, %91, %cst_13 [0] : vector<32x128xf32> to vector<128xf32>
      %93 = vector.shape_cast %92 : vector<128xf32> to vector<1x128xf32>
      %c1 = arith.constant 1 : index
      %c0_14 = arith.constant 0 : index
      %94 = vector.load %arg7[%c1, %c0_14] : memref<8x128xf32, #tpu.memory_space<vmem>>, vector<1x128xf32>
      %95 = arith.maximumf %94, %93 : vector<1x128xf32>
      %c1_15 = arith.constant 1 : index
      %c0_16 = arith.constant 0 : index
      %96 = vector.load %arg7[%c1_15, %c0_16] : memref<8x128xf32, #tpu.memory_space<vmem>>, vector<1x128xf32>
      tpu.vector_store %arg7[%c1_15, %c0_16], %95 {strides = array<i32>} : memref<8x128xf32, #tpu.memory_space<vmem>>, vector<1x128xf32>,
    } else {
    }
    %53 = arith.cmpi sgt, %27, %10 : i32
    %54 = arith.cmpi slt, %24, %11 : i32
    %55 = arith.andi %53, %54 : i1
    %56 = arith.extui %55 : i1 to i32
    %c0_i32_7 = arith.constant 0 : i32
    %57 = arith.cmpi ne, %56, %c0_i32_7 : i32
    scf.if %57 {
      %83 = vector.broadcast %24 : i32 to vector<32x1xi32>
      %84 = arith.cmpi sge, %14, %83 : vector<32x1xi32>
      %85 = vector.broadcast %27 : i32 to vector<32x1xi32>
      %86 = arith.cmpi slt, %14, %85 : vector<32x1xi32>
      %87 = arith.andi %84, %86 : vector<32x1xi1>
      %cst = arith.constant 0xFF800000 : f32
      %88 = vector.shape_cast %87 : vector<32x1xi1> to vector<32x1xi1>
      %89 = vector.broadcast %88 : vector<32x1xi1> to vector<32x128xi1>
      %90 = vector.broadcast %cst : f32 to vector<32x128xf32>
      %91 = arith.select %89, %9, %90 : vector<32x128xi1>, vector<32x128xf32>
      %cst_13 = arith.constant dense<0xFF800000> : vector<128xf32>
      %92 = vector.multi_reduction <maximumf>, %91, %cst_13 [0] : vector<32x128xf32> to vector<128xf32>
      %93 = vector.shape_cast %92 : vector<128xf32> to vector<1x128xf32>
      %c2 = arith.constant 2 : index
      %c0_14 = arith.constant 0 : index
      %94 = vector.load %arg7[%c2, %c0_14] : memref<8x128xf32, #tpu.memory_space<vmem>>, vector<1x128xf32>
      %95 = arith.maximumf %94, %93 : vector<1x128xf32>
      %c2_15 = arith.constant 2 : index
      %c0_16 = arith.constant 0 : index
      %96 = vector.load %arg7[%c2_15, %c0_16] : memref<8x128xf32, #tpu.memory_space<vmem>>, vector<1x128xf32>
      tpu.vector_store %arg7[%c2_15, %c0_16], %95 {strides = array<i32>} : memref<8x128xf32, #tpu.memory_space<vmem>>, vector<1x128xf32>,
    } else {
    }
    %58 = arith.cmpi sgt, %30, %10 : i32
    %59 = arith.cmpi slt, %27, %11 : i32
    %60 = arith.andi %58, %59 : i1
    %61 = arith.extui %60 : i1 to i32
    %c0_i32_8 = arith.constant 0 : i32
    %62 = arith.cmpi ne, %61, %c0_i32_8 : i32
    scf.if %62 {
      %83 = vector.broadcast %27 : i32 to vector<32x1xi32>
      %84 = arith.cmpi sge, %14, %83 : vector<32x1xi32>
      %85 = vector.broadcast %30 : i32 to vector<32x1xi32>
      %86 = arith.cmpi slt, %14, %85 : vector<32x1xi32>
      %87 = arith.andi %84, %86 : vector<32x1xi1>
      %cst = arith.constant 0xFF800000 : f32
      %88 = vector.shape_cast %87 : vector<32x1xi1> to vector<32x1xi1>
      %89 = vector.broadcast %88 : vector<32x1xi1> to vector<32x128xi1>
      %90 = vector.broadcast %cst : f32 to vector<32x128xf32>
      %91 = arith.select %89, %9, %90 : vector<32x128xi1>, vector<32x128xf32>
      %cst_13 = arith.constant dense<0xFF800000> : vector<128xf32>
      %92 = vector.multi_reduction <maximumf>, %91, %cst_13 [0] : vector<32x128xf32> to vector<128xf32>
      %93 = vector.shape_cast %92 : vector<128xf32> to vector<1x128xf32>
      %c3 = arith.constant 3 : index
      %c0_14 = arith.constant 0 : index
      %94 = vector.load %arg7[%c3, %c0_14] : memref<8x128xf32, #tpu.memory_space<vmem>>, vector<1x128xf32>
      %95 = arith.maximumf %94, %93 : vector<1x128xf32>
      %c3_15 = arith.constant 3 : index
      %c0_16 = arith.constant 0 : index
      %96 = vector.load %arg7[%c3_15, %c0_16] : memref<8x128xf32, #tpu.memory_space<vmem>>, vector<1x128xf32>
      tpu.vector_store %arg7[%c3_15, %c0_16], %95 {strides = array<i32>} : memref<8x128xf32, #tpu.memory_space<vmem>>, vector<1x128xf32>,
    } else {
    }
    %63 = arith.cmpi sgt, %33, %10 : i32
    %64 = arith.cmpi slt, %30, %11 : i32
    %65 = arith.andi %63, %64 : i1
    %66 = arith.extui %65 : i1 to i32
    %c0_i32_9 = arith.constant 0 : i32
    %67 = arith.cmpi ne, %66, %c0_i32_9 : i32
    scf.if %67 {
      %83 = vector.broadcast %30 : i32 to vector<32x1xi32>
      %84 = arith.cmpi sge, %14, %83 : vector<32x1xi32>
      %85 = vector.broadcast %33 : i32 to vector<32x1xi32>
      %86 = arith.cmpi slt, %14, %85 : vector<32x1xi32>
      %87 = arith.andi %84, %86 : vector<32x1xi1>
      %cst = arith.constant 0xFF800000 : f32
      %88 = vector.shape_cast %87 : vector<32x1xi1> to vector<32x1xi1>
      %89 = vector.broadcast %88 : vector<32x1xi1> to vector<32x128xi1>
      %90 = vector.broadcast %cst : f32 to vector<32x128xf32>
      %91 = arith.select %89, %9, %90 : vector<32x128xi1>, vector<32x128xf32>
      %cst_13 = arith.constant dense<0xFF800000> : vector<128xf32>
      %92 = vector.multi_reduction <maximumf>, %91, %cst_13 [0] : vector<32x128xf32> to vector<128xf32>
      %93 = vector.shape_cast %92 : vector<128xf32> to vector<1x128xf32>
      %c4 = arith.constant 4 : index
      %c0_14 = arith.constant 0 : index
      %94 = vector.load %arg7[%c4, %c0_14] : memref<8x128xf32, #tpu.memory_space<vmem>>, vector<1x128xf32>
      %95 = arith.maximumf %94, %93 : vector<1x128xf32>
      %c4_15 = arith.constant 4 : index
      %c0_16 = arith.constant 0 : index
      %96 = vector.load %arg7[%c4_15, %c0_16] : memref<8x128xf32, #tpu.memory_space<vmem>>, vector<1x128xf32>
      tpu.vector_store %arg7[%c4_15, %c0_16], %95 {strides = array<i32>} : memref<8x128xf32, #tpu.memory_space<vmem>>, vector<1x128xf32>,
    } else {
    }
    %68 = arith.cmpi sgt, %36, %10 : i32
    %69 = arith.cmpi slt, %33, %11 : i32
    %70 = arith.andi %68, %69 : i1
    %71 = arith.extui %70 : i1 to i32
    %c0_i32_10 = arith.constant 0 : i32
    %72 = arith.cmpi ne, %71, %c0_i32_10 : i32
    scf.if %72 {
      %83 = vector.broadcast %33 : i32 to vector<32x1xi32>
      %84 = arith.cmpi sge, %14, %83 : vector<32x1xi32>
      %85 = vector.broadcast %36 : i32 to vector<32x1xi32>
      %86 = arith.cmpi slt, %14, %85 : vector<32x1xi32>
      %87 = arith.andi %84, %86 : vector<32x1xi1>
      %cst = arith.constant 0xFF800000 : f32
      %88 = vector.shape_cast %87 : vector<32x1xi1> to vector<32x1xi1>
      %89 = vector.broadcast %88 : vector<32x1xi1> to vector<32x128xi1>
      %90 = vector.broadcast %cst : f32 to vector<32x128xf32>
      %91 = arith.select %89, %9, %90 : vector<32x128xi1>, vector<32x128xf32>
      %cst_13 = arith.constant dense<0xFF800000> : vector<128xf32>
      %92 = vector.multi_reduction <maximumf>, %91, %cst_13 [0] : vector<32x128xf32> to vector<128xf32>
      %93 = vector.shape_cast %92 : vector<128xf32> to vector<1x128xf32>
      %c5 = arith.constant 5 : index
      %c0_14 = arith.constant 0 : index
      %94 = vector.load %arg7[%c5, %c0_14] : memref<8x128xf32, #tpu.memory_space<vmem>>, vector<1x128xf32>
      %95 = arith.maximumf %94, %93 : vector<1x128xf32>
      %c5_15 = arith.constant 5 : index
      %c0_16 = arith.constant 0 : index
      %96 = vector.load %arg7[%c5_15, %c0_16] : memref<8x128xf32, #tpu.memory_space<vmem>>, vector<1x128xf32>
      tpu.vector_store %arg7[%c5_15, %c0_16], %95 {strides = array<i32>} : memref<8x128xf32, #tpu.memory_space<vmem>>, vector<1x128xf32>,
    } else {
    }
    %73 = arith.cmpi sgt, %39, %10 : i32
    %74 = arith.cmpi slt, %36, %11 : i32
    %75 = arith.andi %73, %74 : i1
    %76 = arith.extui %75 : i1 to i32
    %c0_i32_11 = arith.constant 0 : i32
    %77 = arith.cmpi ne, %76, %c0_i32_11 : i32
    scf.if %77 {
      %83 = vector.broadcast %36 : i32 to vector<32x1xi32>
      %84 = arith.cmpi sge, %14, %83 : vector<32x1xi32>
      %85 = vector.broadcast %39 : i32 to vector<32x1xi32>
      %86 = arith.cmpi slt, %14, %85 : vector<32x1xi32>
      %87 = arith.andi %84, %86 : vector<32x1xi1>
      %cst = arith.constant 0xFF800000 : f32
      %88 = vector.shape_cast %87 : vector<32x1xi1> to vector<32x1xi1>
      %89 = vector.broadcast %88 : vector<32x1xi1> to vector<32x128xi1>
      %90 = vector.broadcast %cst : f32 to vector<32x128xf32>
      %91 = arith.select %89, %9, %90 : vector<32x128xi1>, vector<32x128xf32>
      %cst_13 = arith.constant dense<0xFF800000> : vector<128xf32>
      %92 = vector.multi_reduction <maximumf>, %91, %cst_13 [0] : vector<32x128xf32> to vector<128xf32>
      %93 = vector.shape_cast %92 : vector<128xf32> to vector<1x128xf32>
      %c6 = arith.constant 6 : index
      %c0_14 = arith.constant 0 : index
      %94 = vector.load %arg7[%c6, %c0_14] : memref<8x128xf32, #tpu.memory_space<vmem>>, vector<1x128xf32>
      %95 = arith.maximumf %94, %93 : vector<1x128xf32>
      %c6_15 = arith.constant 6 : index
      %c0_16 = arith.constant 0 : index
      %96 = vector.load %arg7[%c6_15, %c0_16] : memref<8x128xf32, #tpu.memory_space<vmem>>, vector<1x128xf32>
      tpu.vector_store %arg7[%c6_15, %c0_16], %95 {strides = array<i32>} : memref<8x128xf32, #tpu.memory_space<vmem>>, vector<1x128xf32>,
    } else {
    }
    %78 = arith.cmpi sgt, %42, %10 : i32
    %79 = arith.cmpi slt, %39, %11 : i32
    %80 = arith.andi %78, %79 : i1
    %81 = arith.extui %80 : i1 to i32
    %c0_i32_12 = arith.constant 0 : i32
    %82 = arith.cmpi ne, %81, %c0_i32_12 : i32
    scf.if %82 {
      %83 = vector.broadcast %39 : i32 to vector<32x1xi32>
      %84 = arith.cmpi sge, %14, %83 : vector<32x1xi32>
      %85 = vector.broadcast %42 : i32 to vector<32x1xi32>
      %86 = arith.cmpi slt, %14, %85 : vector<32x1xi32>
      %87 = arith.andi %84, %86 : vector<32x1xi1>
      %cst = arith.constant 0xFF800000 : f32
      %88 = vector.shape_cast %87 : vector<32x1xi1> to vector<32x1xi1>
      %89 = vector.broadcast %88 : vector<32x1xi1> to vector<32x128xi1>
      %90 = vector.broadcast %cst : f32 to vector<32x128xf32>
      %91 = arith.select %89, %9, %90 : vector<32x128xi1>, vector<32x128xf32>
      %cst_13 = arith.constant dense<0xFF800000> : vector<128xf32>
      %92 = vector.multi_reduction <maximumf>, %91, %cst_13 [0] : vector<32x128xf32> to vector<128xf32>
      %93 = vector.shape_cast %92 : vector<128xf32> to vector<1x128xf32>
      %c7 = arith.constant 7 : index
      %c0_14 = arith.constant 0 : index
      %94 = vector.load %arg7[%c7, %c0_14] : memref<8x128xf32, #tpu.memory_space<vmem>>, vector<1x128xf32>
      %95 = arith.maximumf %94, %93 : vector<1x128xf32>
      %c7_15 = arith.constant 7 : index
      %c0_16 = arith.constant 0 : index
      %96 = vector.load %arg7[%c7_15, %c0_16] : memref<8x128xf32, #tpu.memory_space<vmem>>, vector<1x128xf32>
      tpu.vector_store %arg7[%c7_15, %c0_16], %95 {strides = array<i32>} : memref<8x128xf32, #tpu.memory_space<vmem>>, vector<1x128xf32>,
    } else {
    }
    return
  }
  func.func @transform_0(%arg0: i32, %arg1: i32, %arg2: memref<4xi32, #tpu.memory_space<smem>>, %arg3: memref<4xi32, #tpu.memory_space<smem>>, %arg4: memref<4xi32, #tpu.memory_space<smem>>, %arg5: memref<17xi32, #tpu.memory_space<smem>>) -> (i32, i32) {
    %0 = arith.index_cast %arg1 : i32 to index
    %1 = memref.load %arg3[%0] : memref<4xi32, #tpu.memory_space<smem>>
    %c0_i32 = arith.constant 0 : i32
    return %1, %arg0 : i32, i32
  }
  func.func @transform_1(%arg0: i32, %arg1: i32, %arg2: memref<4xi32, #tpu.memory_space<smem>>, %arg3: memref<4xi32, #tpu.memory_space<smem>>, %arg4: memref<4xi32, #tpu.memory_space<smem>>, %arg5: memref<17xi32, #tpu.memory_space<smem>>) -> (i32, i32) {
    %0 = arith.index_cast %arg1 : i32 to index
    %1 = memref.load %arg2[%0] : memref<4xi32, #tpu.memory_space<smem>>
    %c0_i32 = arith.constant 0 : i32
    return %1, %arg0 : i32, i32
  }
}

</mosaic_0001>

<bundles_post_ra>
// kernel: custom-call.1
= control target key start
LH: loop header
LB: loop body
LE: loop exit
PB: predicated region body
PF: predicated region fallthrough
CT: control target
= control target key end

     0   :  { %s6_s0 = inlined_call_operand.vmem [shape: u32[4], index: 0, kind: output, shape index: {}]  }

// kernel: batch_pooling.1
= control target key start
LH: loop header
LB: loop body
LE: loop exit
PB: predicated region body
PF: predicated region fallthrough
CT: control target
= control target key end

     0   :  { %s869_s24 = smov [#allocation3]   ;;  %s870_s25 = smov [#allocation4]   ;;  %s1234_s0 = inlined_call_operand.vmem [shape: s32[4], index: 0, kind: input, shape index: {}]   ;;  %s1235_s4 = inlined_call_operand.vmem [shape: f32[64,128], index: 4, kind: input, shape index: {}]   ;;  %s1236_s5 = inlined_call_operand.hbm [shape: f32[16,128], index: 5, kind: output, shape index: {}]   ;;  %s1237_s1 = inlined_call_operand.vmem [shape: s32[4], index: 1, kind: input, shape index: {}]   ;;  %s1238_s2 = inlined_call_operand.vmem [shape: s32[4], index: 2, kind: input, shape index: {}]   ;;  %s1239_s3 = inlined_call_operand.vmem [shape: s32[17], index: 3, kind: input, shape index: {}]  }
   0x1   :  { %s11_s20 = sshll.u32 %s1234_s0, 4  ;;  %s16_s23 = sshll.u32 %s1237_s1, 4  ;;  %s12_s20 = int_to_ptr.vmem [resolvable:$true] %s11_s20  ;;  %s17_s23 = int_to_ptr.vmem [resolvable:$true] %s16_s23 }
   0x2   :  { %14 = dma.vmem_to_smem %s12_s20, 16, %s869_s24, [#allocation2] }
   0x3   :  { %19 = dma.vmem_to_smem %s17_s23, 16, %s870_s25, [#allocation2] }
   0x4   :  { %s21_s28 = sshll.u32 %s1238_s2, 4  ;;  %s26_s6 = sshll.u32 %s1239_s3, 4  ;;  %s22_s28 = int_to_ptr.vmem [resolvable:$true] %s21_s28  ;;  %s27_s6 = int_to_ptr.vmem [resolvable:$true] %s26_s6 }
   0x5   :  { %s871_s0 = smov [#allocation5]   ;;  %s872_s7 = smov [#allocation6]  }
   0x6   :  { %24 = dma.vmem_to_smem %s22_s28, 16, %s871_s0, [#allocation2] }
   0x7   :  { %29 = dma.vmem_to_smem %s27_s6, 16, %s872_s7, [#allocation2] }
   0x8   :  { %839 = dma.done.wait [#allocation2], 64 }
   0x9   :  { %840 = vsyncadd [#allocation2], 4294967232 }
   0xa   :  { %32 = sfence }
   0xb   :  { %33 = vsyncpa [#allocation8], 0 }
   0xc   :  { %35 = vsyncpa [#allocation8 + $0x1], 0  ;;  %s916_s1 = smov 0   ;;  %s918_s8 = smov 0  }
   0xd   :  { %s920_s2 = smov 0   ;;  %s922_s9 = smov 0  }
   0xe   :  { %s924_s10 = smov 0   ;;  %s926_s3 = smov 0  }
   0xf LB: > { %s662_s11 = sadd.s32 4294967295, %s867_s3   ;;  %s663_s12 = sadd.s32 4294967294, %s867_s3   ;;  %s867_s3 = sphi %s926_s3, %s41_s3   ;;  %s863_s10 = sphi %s924_s10, %s1246_s10   ;;  %s859_s9 = sphi %s922_s9, %s1245_s9   ;;  %s855_s2 = sphi %s920_s2, %s1244_s2   ;;  %s851_s8 = sphi %s918_s8, %s1243_s8   ;;  %s847_s1 = sphi %s916_s1, %s1242_s1  }
  0x10   : > { %s50_s13 = sadd.s32 1, %s863_s10  ;;  %s87_s14 = sld [smem:[#allocation3 + %s863_s10]] }
  0x11   : > { %p51_p0 = scmp.ge.s32.totalorder %s50_s13, 4  ;;  %p104_p1 = scmp.ne.s32.totalorder %s855_s2, %s851_s8 }
  0x12   : > { %p105_p2 = scmp.eq.s32.totalorder %s662_s11, 3  ;;  %p110_p4 = scmp.ne.s32.totalorder %s851_s8, %s847_s1 }
  0x13   : > { %s1248_s13 = smov (%p51_p0, %s50_s13), 0  ;;  %p111_p5 = scmp.eq.s32.totalorder %s663_s12, 3 }
  0x14   : > { %p954_p3 = por %p105_p2, %p104_p1  ;;  %s88_s16 = sld [smem:[#allocation3 + %s1248_s13]] }
  0x15   : > { %p666_p6 = scmp.ge.s32.totalorder %s867_s3, 1  ;;  %p143_p7 = scmp.lt.s32.totalorder %s867_s3, 5 }
  0x16   : > { %p963_p8 = por %p111_p5, %p110_p4  ;;  %s94_s19 = sadd.s32 1, %s855_s2 }
  0x17   : > { %p144_p9 = pnand %p666_p6, %p143_p7 }
  0x18   : > { %s164_s21 = sand.u32 (!%p144_p9), 1, %s851_s8   ;;  %s167_s22 = sld [smem:[#allocation4 + %s859_s9]] (!%p144_p9) }
  0x19   : > { %147 = sbr.rel (%p144_p9) target bundleno = 356 (0x164), region = 24  ;;  %s667_s23 = sshll.u32 (!%p144_p9), %s164_s21, 3 }
  0x1a   : > { %s89_s18 = ssub.s32 %s87_s14, %s88_s16  ;;  %s179_s24 = sld [smem:[#allocation3 + %s859_s9]] (!%p144_p9) }
  0x1b   : > { %p92_p10 = scmp.eq.s32.totalorder %s89_s18, 0  ;;  %s180_s25 = sld [smem:[#allocation4 + %s859_s9]] (!%p144_p9) }
  0x1c   : > { %s181_s26 = sld [smem:[#allocation5 + %s859_s9]] (!%p144_p9)  ;;  %s981_s0 = scalar_lea.vmem (!%p144_p9), [#allocation7], %s667_s23 }
  0x1d   : > { %s969_s20 = scalar_select %p92_p10, %s855_s2, %s94_s19  }
  0x1e   : > { %s668_s27 = sshll.u32 %s167_s22, 2 }
  0x1f   : > { %p169_p11 = scmp.lt.s32.totalorder %s668_s27, 7 }
  0x21   : > { %s1250_s27 = smov (!%p169_p11, %s668_s27), 7 }
  0x22   : > { %s669_s28 = sshll.u32 %s1250_s27, 3  ;;  %p670_p12 = scmp.ne.s32.totalorder %s181_s26, 1 }
  0x23   : > { %s175_s6 = scalar_lea.vmem %s1235_s4, %s669_s28 }
  0x24   : > { %185 = sbr.rel (%p670_p12) target bundleno = 43 (0x2b), region = 28 }
  0x29   : > { %v873_v0 = vmov -inf  }
  0x2a   : > { %186 = vst [vmem:[%s981_s0] sm:$0xff] %v873_v0 }
  0x2b PF: > { %v984_v1 = vld [vmem:[%s175_s6] sm:$0xff]  ;;  %v986_v2 = vld [vmem:[%s175_s6 + $0x8] sm:$0xff]  ;;  %v988_v3 = vld [vmem:[%s175_s6 + $0x10] sm:$0xff]  ;;  %s990_s7 = sshll.u32 %s180_s25, 5  ;;  %v193_v4 = vlaneseq  ;;  %s992_s11 = sshll.u32 %s179_s24, 3 }
  0x2c   : > { %v994_v5 = vld [vmem:[%s175_s6 + $0x18] sm:$0xff]  ;;  %s997_s12 = sadd.s32 32, %s990_s7  ;;  %v198_v6 = vstv %s990_s7  ;;  %s204_s14 = sld [smem:[#allocation6 + %s992_s11]] }
  0x2d   : > { %v194_v7 = vshrl.u32 %v193_v4, 7  ;;  %s205_s16 = sadd.s32 1, %s992_s11  ;;  %s207_s18 = sadd.s32 2, %s992_s11 }
  0x2e   : > { %s1003_s19 = sld [smem:[#allocation6 + %s205_s16]]  ;;  %s209_s22 = sadd.s32 3, %s992_s11 }
  0x2f   : > { %v195_v8 = vadd.s32 8, %v194_v7  ;;  %v196_v9 = vadd.s32 16, %v194_v7  ;;  %v197_v10 = vadd.s32 24, %v194_v7  ;;  %v1006_v11 = vadd.s32 %v198_v6, %v194_v7  ;;  %s1008_s23 = sld [smem:[#allocation6 + %s207_s18]]  ;;  %s211_s24 = sadd.s32 4, %s992_s11 }
  0x30   : > { %s1011_s25 = sld [smem:[#allocation6 + %s209_s22]]  ;;  %s213_s26 = sadd.s32 5, %s992_s11 }
  0x31   : > { %v1014_v12 = vadd.s32 %v198_v6, %v195_v8  ;;  %v1016_v13 = vadd.s32 %v198_v6, %v196_v9  ;;  %v1018_v14 = vadd.s32 %v198_v6, %v197_v10  ;;  %s1020_s27 = sld [smem:[#allocation6 + %s211_s24]]  ;;  %s215_s28 = sadd.s32 6, %s992_s11 }
  0x32   : > { %s1023_s29 = sld [smem:[#allocation6 + %s213_s26]]  ;;  %s217_s30 = sadd.s32 7, %s992_s11 }
  0x33   : > { %s1026_s6 = sld [smem:[#allocation6 + %s215_s28]]  ;;  %s219_s16 = sadd.s32 8, %s992_s11 }
  0x34   : > { %s1029_s18 = sld [smem:[#allocation6 + %s217_s30]]  ;;  %p221_p13 = scmp.gt.s32.totalorder %s1003_s19, %s990_s7 }
  0x35   : > { %s1033_s22 = sld [smem:[#allocation6 + %s219_s16]]  ;;  %p222_p0 = scmp.lt.s32.totalorder %s204_s14, %s997_s12 }
  0x37   : > { %p223_p1 = pnand %p222_p0, %p221_p13 }
  0x39   : > { %226 = sbr.rel (%p223_p1) target bundleno = 88 (0x58), region = 32 }
  0x3e   : > { %v227_v15 = vstv %s204_s14  ;;  %v232_v16 = vstv %s1003_s19  ;;  %v262_v29 = vld [vmem:[%s981_s0] sm:$0x1] }
  0x3f   : > { %vm228_vm0 = vcmp.ge.s32.totalorder %v1006_v11, %v227_v15  ;;  %vm229_vm1 = vcmp.ge.s32.totalorder %v1014_v12, %v227_v15  ;;  %vm230_vm2 = vcmp.ge.s32.totalorder %v1016_v13, %v227_v15  ;;  %vm233_vm3 = vcmp.lt.s32.totalorder %v1006_v11, %v232_v16 }
  0x40   : > { %vm234_vm4 = vcmp.lt.s32.totalorder %v1014_v12, %v232_v16  ;;  %vm235_vm5 = vcmp.lt.s32.totalorder %v1016_v13, %v232_v16  ;;  %vm231_vm6 = vcmp.ge.s32.totalorder %v1018_v14, %v227_v15  ;;  %vm236_vm7 = vcmp.lt.s32.totalorder %v1018_v14, %v232_v16  ;;  %vm237_vm8 = vmand %vm228_vm0, %vm233_vm3 }
  0x41   : > { %vm238_vm9 = vmand %vm229_vm1, %vm234_vm4  ;;  %v249_v17 = vsel %vm237_vm8, %v984_v1, -inf }
  0x42   : > { %vm239_vm10 = vmand %vm230_vm2, %vm235_vm5  ;;  %v250_v18 = vsel %vm238_vm9, %v986_v2, -inf }
  0x43   : > { %vm240_vm11 = vmand %vm231_vm6, %vm236_vm7  ;;  %v251_v19 = vsel %vm239_vm10, %v988_v3, -inf  ;;  %v253_v20 = vmax.f32 %v249_v17, %v250_v18 }
  0x44   : > { %v252_v21 = vsel %vm240_vm11, %v994_v5, -inf }
  0x45   : > { %v254_v22 = vmax.f32 %v251_v19, %v252_v21 }
  0x47   : > { %v255_v23 = vmax.f32 %v253_v20, %v254_v22 }
  0x49   : > { %v256_v24 = vrot.slane %v255_v23, 4 }
  0x4b   : > { %v257_v25 = vmax.f32 %v255_v23, %v256_v24 }
  0x4d   : > { %v258_v26 = vrot.slane %v257_v25, 2 }
  0x4f   : > { %v259_v27 = vmax.f32 %v257_v25, %v258_v26 }
  0x51   : > { %v260_v28 = vrot.slane %v259_v27, 1 }
  0x53   : > { %v261_v30 = vmax.f32 %v259_v27, %v260_v28 }
  0x55   : > { %v263_v31 = vmax.f32 %v262_v29, %v261_v30 }
  0x57   : > { %264 = vst [vmem:[%s981_s0] sm:$0x1] %v263_v31 }
  0x58 PF: > { %p265_p2 = scmp.gt.s32.totalorder %s1008_s23, %s990_s7  ;;  %p266_p4 = scmp.lt.s32.totalorder %s1003_s19, %s997_s12 }
  0x5a   : > { %p267_p5 = pnand %p266_p4, %p265_p2 }
  0x5c   : > { %270 = sbr.rel (%p267_p5) target bundleno = 123 (0x7b), region = 36 }
  0x61   : > { %v271_v32 = vstv %s1003_s19  ;;  %v276_v33 = vstv %s1008_s23  ;;  %v306_v46 = vld [vmem:[%s981_s0 + $0x1] sm:$0x1] }
  0x62   : > { %vm272_vm12 = vcmp.ge.s32.totalorder %v1006_v11, %v271_v32  ;;  %vm273_vm13 = vcmp.ge.s32.totalorder %v1014_v12, %v271_v32  ;;  %vm274_vm14 = vcmp.ge.s32.totalorder %v1016_v13, %v271_v32  ;;  %vm277_vm15 = vcmp.lt.s32.totalorder %v1006_v11, %v276_v33 }
  0x63   : > { %vm278_vm0 = vcmp.lt.s32.totalorder %v1014_v12, %v276_v33  ;;  %vm279_vm1 = vcmp.lt.s32.totalorder %v1016_v13, %v276_v33  ;;  %vm275_vm2 = vcmp.ge.s32.totalorder %v1018_v14, %v271_v32  ;;  %vm280_vm3 = vcmp.lt.s32.totalorder %v1018_v14, %v276_v33  ;;  %vm281_vm4 = vmand %vm272_vm12, %vm277_vm15 }
  0x64   : > { %vm282_vm5 = vmand %vm273_vm13, %vm278_vm0  ;;  %v293_v34 = vsel %vm281_vm4, %v984_v1, -inf }
  0x65   : > { %vm283_vm6 = vmand %vm274_vm14, %vm279_vm1  ;;  %v294_v35 = vsel %vm282_vm5, %v986_v2, -inf }
  0x66   : > { %vm284_vm7 = vmand %vm275_vm2, %vm280_vm3  ;;  %v295_v36 = vsel %vm283_vm6, %v988_v3, -inf  ;;  %v297_v37 = vmax.f32 %v293_v34, %v294_v35 }
  0x67   : > { %v296_v38 = vsel %vm284_vm7, %v994_v5, -inf }
  0x68   : > { %v298_v39 = vmax.f32 %v295_v36, %v296_v38 }
  0x6a   : > { %v299_v40 = vmax.f32 %v297_v37, %v298_v39 }
  0x6c   : > { %v300_v41 = vrot.slane %v299_v40, 4 }
  0x6e   : > { %v301_v42 = vmax.f32 %v299_v40, %v300_v41 }
  0x70   : > { %v302_v43 = vrot.slane %v301_v42, 2 }
  0x72   : > { %v303_v44 = vmax.f32 %v301_v42, %v302_v43 }
  0x74   : > { %v304_v45 = vrot.slane %v303_v44, 1 }
  0x76   : > { %v305_v47 = vmax.f32 %v303_v44, %v304_v45 }
  0x78   : > { %v307_v48 = vmax.f32 %v306_v46, %v305_v47 }
  0x7a   : > { %308 = vst [vmem:[%s981_s0 + $0x1] sm:$0x1] %v307_v48 }
  0x7b PF: > { %p309_p6 = scmp.gt.s32.totalorder %s1011_s25, %s990_s7  ;;  %p310_p7 = scmp.lt.s32.totalorder %s1008_s23, %s997_s12 }
  0x7d   : > { %p311_p9 = pnand %p310_p7, %p309_p6 }
  0x7f   : > { %314 = sbr.rel (%p311_p9) target bundleno = 158 (0x9e), region = 40 }
  0x84   : > { %v315_v49 = vstv %s1008_s23  ;;  %v320_v50 = vstv %s1011_s25  ;;  %v350_v63 = vld [vmem:[%s981_s0 + $0x2] sm:$0x1] }
  0x85   : > { %vm316_vm8 = vcmp.ge.s32.totalorder %v1006_v11, %v315_v49  ;;  %vm317_vm9 = vcmp.ge.s32.totalorder %v1014_v12, %v315_v49  ;;  %vm318_vm10 = vcmp.ge.s32.totalorder %v1016_v13, %v315_v49  ;;  %vm321_vm11 = vcmp.lt.s32.totalorder %v1006_v11, %v320_v50 }
  0x86   : > { %vm322_vm12 = vcmp.lt.s32.totalorder %v1014_v12, %v320_v50  ;;  %vm323_vm13 = vcmp.lt.s32.totalorder %v1016_v13, %v320_v50  ;;  %vm319_vm14 = vcmp.ge.s32.totalorder %v1018_v14, %v315_v49  ;;  %vm324_vm15 = vcmp.lt.s32.totalorder %v1018_v14, %v320_v50  ;;  %vm325_vm0 = vmand %vm316_vm8, %vm321_vm11 }
  0x87   : > { %vm326_vm1 = vmand %vm317_vm9, %vm322_vm12  ;;  %v337_v51 = vsel %vm325_vm0, %v984_v1, -inf }
  0x88   : > { %vm327_vm2 = vmand %vm318_vm10, %vm323_vm13  ;;  %v338_v52 = vsel %vm326_vm1, %v986_v2, -inf }
  0x89   : > { %vm328_vm3 = vmand %vm319_vm14, %vm324_vm15  ;;  %v339_v53 = vsel %vm327_vm2, %v988_v3, -inf  ;;  %v341_v54 = vmax.f32 %v337_v51, %v338_v52 }
  0x8a   : > { %v340_v55 = vsel %vm328_vm3, %v994_v5, -inf }
  0x8b   : > { %v342_v56 = vmax.f32 %v339_v53, %v340_v55 }
  0x8d   : > { %v343_v57 = vmax.f32 %v341_v54, %v342_v56 }
  0x8f   : > { %v344_v58 = vrot.slane %v343_v57, 4 }
  0x91   : > { %v345_v59 = vmax.f32 %v343_v57, %v344_v58 }
  0x93   : > { %v346_v60 = vrot.slane %v345_v59, 2 }
  0x95   : > { %v347_v61 = vmax.f32 %v345_v59, %v346_v60 }
  0x97   : > { %v348_v62 = vrot.slane %v347_v61, 1 }
  0x99   : > { %v349_v0 = vmax.f32 %v347_v61, %v348_v62 }
  0x9b   : > { %v351_v4 = vmax.f32 %v350_v63, %v349_v0 }
  0x9d   : > { %352 = vst [vmem:[%s981_s0 + $0x2] sm:$0x1] %v351_v4 }
  0x9e PF: > { %p353_p10 = scmp.gt.s32.totalorder %s1020_s27, %s990_s7  ;;  %p354_p11 = scmp.lt.s32.totalorder %s1011_s25, %s997_s12 }
  0xa0   : > { %p355_p12 = pnand %p354_p11, %p353_p10 }
  0xa2   : > { %358 = sbr.rel (%p355_p12) target bundleno = 193 (0xc1), region = 44 }
  0xa7   : > { %v359_v6 = vstv %s1011_s25  ;;  %v364_v7 = vstv %s1020_s27  ;;  %v394_v24 = vld [vmem:[%s981_s0 + $0x3] sm:$0x1] }
  0xa8   : > { %vm360_vm4 = vcmp.ge.s32.totalorder %v1006_v11, %v359_v6  ;;  %vm361_vm5 = vcmp.ge.s32.totalorder %v1014_v12, %v359_v6  ;;  %vm362_vm6 = vcmp.ge.s32.totalorder %v1016_v13, %v359_v6  ;;  %vm365_vm7 = vcmp.lt.s32.totalorder %v1006_v11, %v364_v7 }
  0xa9   : > { %vm366_vm8 = vcmp.lt.s32.totalorder %v1014_v12, %v364_v7  ;;  %vm367_vm9 = vcmp.lt.s32.totalorder %v1016_v13, %v364_v7  ;;  %vm363_vm10 = vcmp.ge.s32.totalorder %v1018_v14, %v359_v6  ;;  %vm368_vm11 = vcmp.lt.s32.totalorder %v1018_v14, %v364_v7  ;;  %vm369_vm12 = vmand %vm360_vm4, %vm365_vm7 }
  0xaa   : > { %vm370_vm13 = vmand %vm361_vm5, %vm366_vm8  ;;  %v381_v8 = vsel %vm369_vm12, %v984_v1, -inf }
  0xab   : > { %vm371_vm14 = vmand %vm362_vm6, %vm367_vm9  ;;  %v382_v9 = vsel %vm370_vm13, %v986_v2, -inf }
  0xac   : > { %vm372_vm15 = vmand %vm363_vm10, %vm368_vm11  ;;  %v383_v10 = vsel %vm371_vm14, %v988_v3, -inf  ;;  %v385_v15 = vmax.f32 %v381_v8, %v382_v9 }
  0xad   : > { %v384_v16 = vsel %vm372_vm15, %v994_v5, -inf }
  0xae   : > { %v386_v17 = vmax.f32 %v383_v10, %v384_v16 }
  0xb0   : > { %v387_v18 = vmax.f32 %v385_v15, %v386_v17 }
  0xb2   : > { %v388_v19 = vrot.slane %v387_v18, 4 }
  0xb4   : > { %v389_v20 = vmax.f32 %v387_v18, %v388_v19 }
  0xb6   : > { %v390_v21 = vrot.slane %v389_v20, 2 }
  0xb8   : > { %v391_v22 = vmax.f32 %v389_v20, %v390_v21 }
  0xba   : > { %v392_v23 = vrot.slane %v391_v22, 1 }
  0xbc   : > { %v393_v25 = vmax.f32 %v391_v22, %v392_v23 }
  0xbe   : > { %v395_v26 = vmax.f32 %v394_v24, %v393_v25 }
  0xc0   : > { %396 = vst [vmem:[%s981_s0 + $0x3] sm:$0x1] %v395_v26 }
  0xc1 PF: > { %p397_p13 = scmp.gt.s32.totalorder %s1023_s29, %s990_s7  ;;  %p398_p0 = scmp.lt.s32.totalorder %s1020_s27, %s997_s12 }
  0xc3   : > { %p399_p1 = pnand %p398_p0, %p397_p13 }
  0xc5   : > { %402 = sbr.rel (%p399_p1) target bundleno = 228 (0xe4), region = 48 }
  0xca   : > { %v403_v27 = vstv %s1020_s27  ;;  %v408_v28 = vstv %s1023_s29  ;;  %v438_v41 = vld [vmem:[%s981_s0 + $0x4] sm:$0x1] }
  0xcb   : > { %vm404_vm0 = vcmp.ge.s32.totalorder %v1006_v11, %v403_v27  ;;  %vm405_vm1 = vcmp.ge.s32.totalorder %v1014_v12, %v403_v27  ;;  %vm406_vm2 = vcmp.ge.s32.totalorder %v1016_v13, %v403_v27  ;;  %vm409_vm3 = vcmp.lt.s32.totalorder %v1006_v11, %v408_v28 }
  0xcc   : > { %vm410_vm4 = vcmp.lt.s32.totalorder %v1014_v12, %v408_v28  ;;  %vm411_vm5 = vcmp.lt.s32.totalorder %v1016_v13, %v408_v28  ;;  %vm407_vm6 = vcmp.ge.s32.totalorder %v1018_v14, %v403_v27  ;;  %vm412_vm7 = vcmp.lt.s32.totalorder %v1018_v14, %v408_v28  ;;  %vm413_vm8 = vmand %vm404_vm0, %vm409_vm3 }
  0xcd   : > { %vm414_vm9 = vmand %vm405_vm1, %vm410_vm4  ;;  %v425_v29 = vsel %vm413_vm8, %v984_v1, -inf }
  0xce   : > { %vm415_vm10 = vmand %vm406_vm2, %vm411_vm5  ;;  %v426_v30 = vsel %vm414_vm9, %v986_v2, -inf }
  0xcf   : > { %vm416_vm11 = vmand %vm407_vm6, %vm412_vm7  ;;  %v427_v31 = vsel %vm415_vm10, %v988_v3, -inf  ;;  %v429_v32 = vmax.f32 %v425_v29, %v426_v30 }
  0xd0   : > { %v428_v33 = vsel %vm416_vm11, %v994_v5, -inf }
  0xd1   : > { %v430_v34 = vmax.f32 %v427_v31, %v428_v33 }
  0xd3   : > { %v431_v35 = vmax.f32 %v429_v32, %v430_v34 }
  0xd5   : > { %v432_v36 = vrot.slane %v431_v35, 4 }
  0xd7   : > { %v433_v37 = vmax.f32 %v431_v35, %v432_v36 }
  0xd9   : > { %v434_v38 = vrot.slane %v433_v37, 2 }
  0xdb   : > { %v435_v39 = vmax.f32 %v433_v37, %v434_v38 }
  0xdd   : > { %v436_v40 = vrot.slane %v435_v39, 1 }
  0xdf   : > { %v437_v42 = vmax.f32 %v435_v39, %v436_v40 }
  0xe1   : > { %v439_v43 = vmax.f32 %v438_v41, %v437_v42 }
  0xe3   : > { %440 = vst [vmem:[%s981_s0 + $0x4] sm:$0x1] %v439_v43 }
  0xe4 PF: > { %p441_p2 = scmp.gt.s32.totalorder %s1026_s6, %s990_s7  ;;  %p442_p4 = scmp.lt.s32.totalorder %s1023_s29, %s997_s12 }
  0xe6   : > { %p443_p5 = pnand %p442_p4, %p441_p2 }
  0xe8   : > { %446 = sbr.rel (%p443_p5) target bundleno = 263 (0x107), region = 52 }
  0xed   : > { %v447_v44 = vstv %s1023_s29  ;;  %v452_v45 = vstv %s1026_s6  ;;  %v482_v58 = vld [vmem:[%s981_s0 + $0x5] sm:$0x1] }
  0xee   : > { %vm448_vm12 = vcmp.ge.s32.totalorder %v1006_v11, %v447_v44  ;;  %vm449_vm13 = vcmp.ge.s32.totalorder %v1014_v12, %v447_v44  ;;  %vm450_vm14 = vcmp.ge.s32.totalorder %v1016_v13, %v447_v44  ;;  %vm453_vm15 = vcmp.lt.s32.totalorder %v1006_v11, %v452_v45 }
  0xef   : > { %vm454_vm0 = vcmp.lt.s32.totalorder %v1014_v12, %v452_v45  ;;  %vm455_vm1 = vcmp.lt.s32.totalorder %v1016_v13, %v452_v45  ;;  %vm451_vm2 = vcmp.ge.s32.totalorder %v1018_v14, %v447_v44  ;;  %vm456_vm3 = vcmp.lt.s32.totalorder %v1018_v14, %v452_v45  ;;  %vm457_vm4 = vmand %vm448_vm12, %vm453_vm15 }
  0xf0   : > { %vm458_vm5 = vmand %vm449_vm13, %vm454_vm0  ;;  %v469_v46 = vsel %vm457_vm4, %v984_v1, -inf }
  0xf1   : > { %vm459_vm6 = vmand %vm450_vm14, %vm455_vm1  ;;  %v470_v47 = vsel %vm458_vm5, %v986_v2, -inf }
  0xf2   : > { %vm460_vm7 = vmand %vm451_vm2, %vm456_vm3  ;;  %v471_v48 = vsel %vm459_vm6, %v988_v3, -inf  ;;  %v473_v49 = vmax.f32 %v469_v46, %v470_v47 }
  0xf3   : > { %v472_v50 = vsel %vm460_vm7, %v994_v5, -inf }
  0xf4   : > { %v474_v51 = vmax.f32 %v471_v48, %v472_v50 }
  0xf6   : > { %v475_v52 = vmax.f32 %v473_v49, %v474_v51 }
  0xf8   : > { %v476_v53 = vrot.slane %v475_v52, 4 }
  0xfa   : > { %v477_v54 = vmax.f32 %v475_v52, %v476_v53 }
  0xfc   : > { %v478_v55 = vrot.slane %v477_v54, 2 }
  0xfe   : > { %v479_v56 = vmax.f32 %v477_v54, %v478_v55 }
 0x100   : > { %v480_v57 = vrot.slane %v479_v56, 1 }
 0x102   : > { %v481_v59 = vmax.f32 %v479_v56, %v480_v57 }
 0x104   : > { %v483_v60 = vmax.f32 %v482_v58, %v481_v59 }
 0x106   : > { %484 = vst [vmem:[%s981_s0 + $0x5] sm:$0x1] %v483_v60 }
 0x107 PF: > { %p485_p6 = scmp.gt.s32.totalorder %s1029_s18, %s990_s7  ;;  %p486_p7 = scmp.lt.s32.totalorder %s1026_s6, %s997_s12 }
 0x109   : > { %p487_p9 = pnand %p486_p7, %p485_p6 }
 0x10b   : > { %490 = sbr.rel (%p487_p9) target bundleno = 298 (0x12a), region = 56 }
 0x110   : > { %v491_v61 = vstv %s1026_s6  ;;  %v496_v62 = vstv %s1029_s18  ;;  %v526_v19 = vld [vmem:[%s981_s0 + $0x6] sm:$0x1] }
 0x111   : > { %vm492_vm8 = vcmp.ge.s32.totalorder %v1006_v11, %v491_v61  ;;  %vm493_vm9 = vcmp.ge.s32.totalorder %v1014_v12, %v491_v61  ;;  %vm494_vm10 = vcmp.ge.s32.totalorder %v1016_v13, %v491_v61  ;;  %vm497_vm11 = vcmp.lt.s32.totalorder %v1006_v11, %v496_v62 }
 0x112   : > { %vm498_vm12 = vcmp.lt.s32.totalorder %v1014_v12, %v496_v62  ;;  %vm499_vm13 = vcmp.lt.s32.totalorder %v1016_v13, %v496_v62  ;;  %vm495_vm14 = vcmp.ge.s32.totalorder %v1018_v14, %v491_v61  ;;  %vm500_vm15 = vcmp.lt.s32.totalorder %v1018_v14, %v496_v62  ;;  %vm501_vm0 = vmand %vm492_vm8, %vm497_vm11 }
 0x113   : > { %vm502_vm1 = vmand %vm493_vm9, %vm498_vm12  ;;  %v513_v63 = vsel %vm501_vm0, %v984_v1, -inf }
 0x114   : > { %vm503_vm2 = vmand %vm494_vm10, %vm499_vm13  ;;  %v514_v0 = vsel %vm502_vm1, %v986_v2, -inf }
 0x115   : > { %vm504_vm3 = vmand %vm495_vm14, %vm500_vm15  ;;  %v515_v4 = vsel %vm503_vm2, %v988_v3, -inf  ;;  %v517_v6 = vmax.f32 %v513_v63, %v514_v0 }
 0x116   : > { %v516_v7 = vsel %vm504_vm3, %v994_v5, -inf }
 0x117   : > { %v518_v8 = vmax.f32 %v515_v4, %v516_v7 }
 0x119   : > { %v519_v9 = vmax.f32 %v517_v6, %v518_v8 }
 0x11b   : > { %v520_v10 = vrot.slane %v519_v9, 4 }
 0x11d   : > { %v521_v15 = vmax.f32 %v519_v9, %v520_v10 }
 0x11f   : > { %v522_v16 = vrot.slane %v521_v15, 2 }
 0x121   : > { %v523_v17 = vmax.f32 %v521_v15, %v522_v16 }
 0x123   : > { %v524_v18 = vrot.slane %v523_v17, 1 }
 0x125   : > { %v525_v20 = vmax.f32 %v523_v17, %v524_v18 }
 0x127   : > { %v527_v21 = vmax.f32 %v526_v19, %v525_v20 }
 0x129   : > { %528 = vst [vmem:[%s981_s0 + $0x6] sm:$0x1] %v527_v21 }
 0x12a PF: > { %p529_p10 = scmp.gt.s32.totalorder %s1033_s22, %s990_s7  ;;  %p530_p11 = scmp.lt.s32.totalorder %s1029_s18, %s997_s12 }
 0x12c   : > { %p531_p12 = pnand %p530_p11, %p529_p10 }
 0x12e   : > { %534 = sbr.rel (%p531_p12) target bundleno = 333 (0x14d), region = 60 }
 0x133   : > { %v535_v22 = vstv %s1029_s18  ;;  %v540_v23 = vstv %s1033_s22  ;;  %v570_v32 = vld [vmem:[%s981_s0 + $0x7] sm:$0x1] }
 0x134   : > { %vm536_vm4 = vcmp.ge.s32.totalorder %v1006_v11, %v535_v22  ;;  %vm537_vm5 = vcmp.ge.s32.totalorder %v1014_v12, %v535_v22  ;;  %vm538_vm6 = vcmp.ge.s32.totalorder %v1016_v13, %v535_v22  ;;  %vm541_vm7 = vcmp.lt.s32.totalorder %v1006_v11, %v540_v23 }
 0x135   : > { %vm542_vm8 = vcmp.lt.s32.totalorder %v1014_v12, %v540_v23  ;;  %vm543_vm9 = vcmp.lt.s32.totalorder %v1016_v13, %v540_v23  ;;  %vm539_vm10 = vcmp.ge.s32.totalorder %v1018_v14, %v535_v22  ;;  %vm544_vm11 = vcmp.lt.s32.totalorder %v1018_v14, %v540_v23  ;;  %vm545_vm12 = vmand %vm536_vm4, %vm541_vm7 }
 0x136   : > { %vm546_vm13 = vmand %vm537_vm5, %vm542_vm8  ;;  %v557_v24 = vsel %vm545_vm12, %v984_v1, -inf }
 0x137   : > { %vm547_vm14 = vmand %vm538_vm6, %vm543_vm9  ;;  %v558_v25 = vsel %vm546_vm13, %v986_v2, -inf }
 0x138   : > { %vm548_vm15 = vmand %vm539_vm10, %vm544_vm11  ;;  %v559_v11 = vsel %vm547_vm14, %v988_v3, -inf  ;;  %v561_v26 = vmax.f32 %v557_v24, %v558_v25 }
 0x139   : > { %v560_v12 = vsel %vm548_vm15, %v994_v5, -inf }
 0x13a   : > { %v562_v13 = vmax.f32 %v559_v11, %v560_v12 }
 0x13c   : > { %v563_v27 = vmax.f32 %v561_v26, %v562_v13 }
 0x13e   : > { %v564_v28 = vrot.slane %v563_v27, 4 }
 0x140   : > { %v565_v29 = vmax.f32 %v563_v27, %v564_v28 }
 0x142   : > { %v566_v14 = vrot.slane %v565_v29, 2 }
 0x144   : > { %v567_v30 = vmax.f32 %v565_v29, %v566_v14 }
 0x146   : > { %v568_v31 = vrot.slane %v567_v30, 1 }
 0x148   : > { %v569_v33 = vmax.f32 %v567_v30, %v568_v31 }
 0x14a   : > { %v571_v1 = vmax.f32 %v570_v32, %v569_v33 }
 0x14c   : > { %572 = vst [vmem:[%s981_s0 + $0x7] sm:$0x1] %v571_v1 }
 0x14d PF: > { %s677_s7 = scalar_select %p954_p3, [#allocation3], [#allocation9] }
 0x14e   : > { %s1252_s9 = smov (!%p954_p3, %s859_s9), 0  ;;  %s588_s12 = sshll.u32 %s981_s0, 4  ;;  %s589_s12 = int_to_ptr.vmem [resolvable:$true] %s588_s12 }
 0x14f   : > { %s581_s11 = sld [smem:[%s677_s7 + %s1252_s9]]  ;;  %s574_s26 = scalar_lea.sflag [#allocation8], %s164_s21 }
 0x150   : > { %s807_s0 = scalar_lea.hbm %s1236_s5, 16 }
 0x155   : > { %s674_s14 = sshll.u32 %s581_s11, 3 }
 0x156   : > { %s586_s24 = scalar_lea.hbm %s1236_s5, %s674_s14 }
 0x157   : > { %s590_s25 = sshll.u32 %s586_s24, 4  ;;  %s591_s25 = int_to_ptr.hbm [resolvable:$true] %s590_s25 }
 0x158   : > { %s801_s27 = sshra.s32 %s591_s25, 4  ;;  %s802_s27 = int_to_ptr.hbm [resolvable:$true] %s801_s27 }
 0x159   : > { %s803_s28 = scalar_lea.hbm %s802_s27, 8  ;;  %p808_p2 = scmp.lt.s32.totalorder %s802_s27, %s1236_s5 }
 0x15a   : > { %p804_p13 = scmp.ne.s32.totalorder %s802_s27, %s803_s28  ;;  %p809_p4 = scmp.lt.s32.totalorder %s807_s0, %s803_s28 }
 0x15c   : > { %p805_p0 = pnand %p804_p13, %p954_p3  ;;  %p810_p5 = por %p809_p4, %p808_p2 }
 0x15e   : > { %p806_p1 = pneg %p805_p0 }
 0x160   : > { %p811_p6 = pnand %p810_p5, %p806_p1 }
 0x162   : > { %814 = shalt.err (!%p811_p6)
}
 0x163   : > { %679 = dma.vmem_to_hbm [thread:$0]  (%p954_p3), %s589_s12, 128, %s591_s25, %s574_s26  }
 0x164 PF: > { %p685_p7 = scmp.ge.s32.totalorder %s867_s3, 2  ;;  %s602_s21 = sand.u32 1, %s847_s1  }
 0x165   : > { %s603_s16 = scalar_lea.sflag [#allocation8], %s602_s21 }
 0x166   : > { %p682_p9 = pnand %p685_p7, %p963_p8 }
 0x168   : > { %p683_p10 = pneg %p682_p9 }
 0x16a   : > { %842 = dma.done.wait (%p683_p10), %s603_s16, 128  }
 0x16b   : > { %844 = vsyncadd (%p683_p10), %s603_s16, 4294967168  ;;  %s41_s3 = sadd.s32 1, %s867_s3   ;;  %s1242_s1 = smov %s851_s8 }
 0x16c   : > { %p38_p11 = scmp.ge.s32.totalorder %s41_s3, 6   ;;  %s1243_s8 = smov %s855_s2 }
 0x16d   : > { %s1244_s2 = smov %s969_s20  ;;  %s1245_s9 = smov %s863_s10 }
 0x16e   : > { %s1246_s10 = smov %s1248_s13  ;;  %40 = sbr.rel (!%p38_p11) target bundleno = 15 (0xf), region = 95 }
 0x173   :  { %609 = vsyncpa [#allocation8], 1 }
 0x174   :  { %611 = vsyncpa [#allocation8 + $0x1], 1 }

</bundles_post_ra>
